<compile_context>
chip_gen: v7x
topology: tpu7x:2x2x1
jax: 0.10.0
libtpu: 0.0.40
codegen_flags: <defaults>
</compile_context>

<pallas_src>
import functools
import math

import jax
import jax.numpy as jnp
from jax import lax
from jax.experimental import pallas as pl
from jax.experimental.pallas import tpu as pltpu


def _nl_block_kernel(x_ref, wt_ref, bt_ref, wp_ref, bp_ref, o_ref, theta_ref, *, tq):
    # x_ref    : (1, C, HW) bf16   one batch element, channels-first, lane-dense
    # wt_ref   : (C, C)     bf16   theta 1x1-conv weight with 1/sqrt(C) folded in
    # bt_ref   : (C, 1)     f32    theta bias with 1/sqrt(C) folded in
    # wp_ref   : (C, C)     bf16   phi 1x1-conv weight
    # bp_ref   : (C, 1)     f32    phi bias
    # o_ref    : (1, TQ, HW)       sigmoid(phi_tile^T @ theta); rows = q tile, cols = p
    # theta_ref: (C, HW)    bf16   VMEM scratch: theta for the current batch element
    q = pl.program_id(1)

    # Hoisted per-batch work: theta = scale*(Wt @ x + bt) is computed once (q == 0)
    # and carried across the (sequential / "arbitrary") q axis in VMEM scratch,
    # instead of being redone for every q tile.
    @pl.when(q == 0)
    def _():
        th = jnp.dot(wt_ref[...], x_ref[0],
                     preferred_element_type=jnp.float32) + bt_ref[...]   # (C, HW) f32
        theta_ref[...] = th.astype(theta_ref.dtype)

    # phi only for this q tile; tq % 128 == 0 keeps the dynamic slice lane-aligned.
    q0 = pl.multiple_of(q * tq, 128)
    x_q = x_ref[0, :, pl.ds(q0, tq)]                                     # (C, TQ) bf16
    phi = jnp.dot(wp_ref[...], x_q,
                  preferred_element_type=jnp.float32) + bp_ref[...]      # (C, TQ) f32
    phi = phi.astype(theta_ref.dtype)                                    # bf16 for MXU

    # y[q', p] = sum_c phi[c, q'] * theta[c, p]   (contract over the channel dim)
    y = lax.dot_general(phi, theta_ref[...], (((0,), (0,)), ((), ())),
                        preferred_element_type=jnp.float32)              # (TQ, HW) f32

    # sigmoid(y) = 0.5 * tanh(0.5 * y) + 0.5  -> a single EUP transcendental.
    o_ref[0] = (0.5 * jnp.tanh(0.5 * y) + 0.5).astype(o_ref.dtype)


def _pick_tile(hw, tq):
    """Largest multiple of 128 that divides hw and is <= requested tq (>= 128)."""
    if hw % 128 != 0:
        # TODO(synk): pad H*W up to a multiple of 128 in the wrapper for shapes like 14x14.
        raise ValueError(f"H*W = {hw} must be a multiple of 128")
    best = 128
    t = 128
    while t <= min(max(tq, 128), hw):
        if hw % t == 0:
            best = t
        t += 128
    return best


def nl_block_nd(x_nchw, w_theta, b_theta, w_phi, b_phi, *,
                tq=256, out_dtype=jnp.bfloat16):
    """NLBlockND.forward.  x_nchw: (N, C, H, W); weights (C, C); biases (C,).

    Returns sigmoid(matmul(theta^T, phi) / sqrt(C)).permute(0, 2, 1) reshaped to
    (N, H, W, H, W), matching the PyTorch module.
    """
    N, C, H, W = x_nchw.shape
    HW = H * W
    scale = 1.0 / math.sqrt(C)
    tq = _pick_tile(HW, tq)

    # Native layout NCHW -> (N, C, HW); bf16 MXU inputs (f32 accumulation in-kernel).
    x_flat = x_nchw.reshape(N, C, HW).astype(jnp.bfloat16)
    # Fold the 1/sqrt(C) scale into theta's weight and bias (touches only CxC + C once).
    wt = (w_theta.astype(jnp.float32) * scale).astype(jnp.bfloat16)
    bt = (b_theta.astype(jnp.float32) * scale).reshape(C, 1)
    wp = w_phi.astype(jnp.bfloat16)
    bp = b_phi.astype(jnp.float32).reshape(C, 1)

    out_bytes = jnp.dtype(out_dtype).itemsize
    # VMEM budget: double-buffered x + out blocks, bf16 theta scratch, f32 y intermediate,
    # resident weights/biases.  Capped at 48 MiB so it also fits v7x's 64 MiB VMEM.
    vmem_est = (2 * C * HW * 2                 # x block (bf16, double-buffered)
                + 2 * tq * HW * out_bytes      # out block (double-buffered)
                + C * HW * 2                   # theta scratch (bf16)
                + tq * HW * 4                  # f32 y intermediate
                + 4 * (C * C * 2 + C * 4))     # weights + biases
    vmem_limit = max(16 << 20, min(int(1.5 * vmem_est) + (2 << 20), 48 << 20))

    cost = pl.CostEstimate(
        flops=int(N * (4 * C * C * HW + 2 * C * HW * HW)),
        transcendentals=int(N * HW * HW),
        bytes_accessed=int(N * C * HW * 2 + 4 * C * C + N * HW * HW * out_bytes),
    )

    kernel = functools.partial(_nl_block_kernel, tq=tq)

    out = pl.pallas_call(
        kernel,
        out_shape=jax.ShapeDtypeStruct((N, HW, HW), out_dtype),
        grid_spec=pltpu.PrefetchScalarGridSpec(
            num_scalar_prefetch=0,
            grid=(N, HW // tq),
            in_specs=[
                # x block is constant across q -> stays VMEM-resident per batch element.
                pl.BlockSpec((1, C, HW), lambda n, q: (n, 0, 0)),
                # Weights/biases: constant index maps -> fetched once, stay resident.
                pl.BlockSpec((C, C), lambda n, q: (0, 0)),
                pl.BlockSpec((C, 1), lambda n, q: (0, 0)),
                pl.BlockSpec((C, C), lambda n, q: (0, 0)),
                pl.BlockSpec((C, 1), lambda n, q: (0, 0)),
            ],
            out_specs=pl.BlockSpec((1, tq, HW), lambda n, q: (n, q, 0)),
            scratch_shapes=[pltpu.VMEM((C, HW), jnp.bfloat16)],   # carried theta
        ),
        compiler_params=pltpu.CompilerParams(
            # The theta scratch is carried across the q axis -> q must be "arbitrary";
            # the batch axis stays "parallel" for megacore sharding.
            dimension_semantics=("parallel", "arbitrary"),
            vmem_limit_bytes=vmem_limit),
        cost_estimate=cost,
    )(x_flat, wt, bt, wp, bp)

    # (N, HW, HW) -> (N, H, W, H, W)  (matches sig_y.view(N, H, W, H, W))
    return out.reshape(N, H, W, H, W)


def _reference(x_nchw, w_theta, b_theta, w_phi, b_phi):
    """Pure-JAX f32 reference mirroring the PyTorch forward."""
    N, C, H, W = x_nchw.shape
    HW = H * W
    x_flat = x_nchw.reshape(N, C, HW)                      # (N, C, HW)
    theta = jnp.einsum("oc,ncp->nop", w_theta, x_flat) + b_theta[None, :, None]
    phi = jnp.einsum("oc,ncp->nop", w_phi, x_flat) + b_phi[None, :, None]
    theta_t = jnp.transpose(theta, (0, 2, 1))              # (N, HW, C)
    f = jnp.einsum("npc,ncq->npq", theta_t, phi) / math.sqrt(C)
    y = jnp.transpose(f, (0, 2, 1))                        # (N, HW, HW)
    return jax.nn.sigmoid(y).reshape(N, H, W, H, W)


if __name__ == "__main__":
    # Small shapes: batch=2, in_channels=8, spatial 16x16 (HW = 256).
    N, C, H, W = 2, 8, 16, 16

    key = jax.random.PRNGKey(0)
    kx, kwt, kbt, kwp, kbp = jax.random.split(key, 5)

    x = jax.random.normal(kx, (N, C, H, W), dtype=jnp.float32)
    # Synthetic 1x1-conv parameters (PyTorch shape (C, C, 1, 1) -> (C, C)).
    w_theta = jax.random.normal(kwt, (C, C), dtype=jnp.float32) * 0.1
    b_theta = jax.random.normal(kbt, (C,), dtype=jnp.float32) * 0.1
    w_phi = jax.random.normal(kwp, (C, C), dtype=jnp.float32) * 0.1
    b_phi = jax.random.normal(kbp, (C,), dtype=jnp.float32) * 0.1

    ref = _reference(x, w_theta, b_theta, w_phi, b_phi)

    # Default bf16 output, tq=128 -> grid (2, 2): exercises the carried theta scratch.
    out_bf16 = nl_block_nd(x, w_theta, b_theta, w_phi, b_phi, tq=128)
    out_bf16 = jax.block_until_ready(out_bf16)
    assert out_bf16.shape == (N, H, W, H, W)
    assert out_bf16.dtype == jnp.bfloat16
    assert jnp.allclose(out_bf16.astype(jnp.float32), ref, atol=2e-2, rtol=2e-2)

    # f32 output, default tile (tq -> 256, single q tile per batch element).
    out_f32 = nl_block_nd(x, w_theta, b_theta, w_phi, b_phi, out_dtype=jnp.float32)
    out_f32 = jax.block_until_ready(out_f32)
    assert out_f32.shape == (N, H, W, H, W)
    assert jnp.allclose(out_f32, ref, atol=1e-2, rtol=1e-2)

    print("KERNEL_OK")
</pallas_src>

<mosaic_0001>
module attributes {stable_mosaic.version = 11 : i64} {
  func.func @_nl_block_kernel(%arg0: i32, %arg1: i32, %arg2: memref<1x8x256xbf16, #tpu.memory_space<vmem>>, %arg3: memref<8x8xbf16, #tpu.memory_space<vmem>>, %arg4: memref<8x1xf32, #tpu.memory_space<vmem>>, %arg5: memref<8x8xbf16, #tpu.memory_space<vmem>>, %arg6: memref<8x1xf32, #tpu.memory_space<vmem>>, %arg7: memref<1x128x256xbf16, #tpu.memory_space<vmem>>, %arg8: memref<8x256xbf16, #tpu.memory_space<vmem>>) attributes {dimension_semantics = [#tpu.dimension_semantics<parallel>, #tpu.dimension_semantics<arbitrary>], iteration_bounds = array<i64: 2, 2>, scalar_prefetch = 0 : i64, scratch_operands = 1 : i64, tpu.core_type = #tpu.core_type<tc>, window_params = [{transform_indices = @transform_0, window_bounds = array<i64: 1, 8, 256>}, {pipeline_mode = #tpu.pipeline_mode<synchronous>, transform_indices = @transform_1, window_bounds = array<i64: 8, 8>}, {pipeline_mode = #tpu.pipeline_mode<synchronous>, transform_indices = @transform_2, window_bounds = array<i64: 8, 1>}, {pipeline_mode = #tpu.pipeline_mode<synchronous>, transform_indices = @transform_3, window_bounds = array<i64: 8, 8>}, {pipeline_mode = #tpu.pipeline_mode<synchronous>, transform_indices = @transform_4, window_bounds = array<i64: 8, 1>}, {transform_indices = @transform_5, window_bounds = array<i64: 1, 128, 256>}]} {
    %c0_i32 = arith.constant 0 : i32
    %0 = arith.cmpi eq, %arg1, %c0_i32 : i32
    %1 = arith.extui %0 : i1 to i32
    %c0_i32_0 = arith.constant 0 : i32
    %2 = arith.cmpi ne, %1, %c0_i32_0 : i32
    scf.if %2 {
      %c0_15 = arith.constant 0 : index
      %c0_16 = arith.constant 0 : index
      %27 = vector.load %arg3[%c0_15, %c0_16] : memref<8x8xbf16, #tpu.memory_space<vmem>>, vector<8x8xbf16>
      %c0_17 = arith.constant 0 : index
      %c0_18 = arith.constant 0 : index
      %c0_19 = arith.constant 0 : index
      %28 = vector.load %arg2[%c0_17, %c0_18, %c0_19] : memref<1x8x256xbf16, #tpu.memory_space<vmem>>, vector<1x8x256xbf16>
      %29 = vector.shape_cast %28 : vector<1x8x256xbf16> to vector<8x256xbf16>
      %cst_20 = arith.constant dense<0.000000e+00> : vector<8x256xf32>
      %30 = tpu.matmul %27, %29, %cst_20 {dimension_numbers = #tpu.dot_dimension_numbers<[1], [0], [0], [1], [0, 0, 1, 1], [], []>} : vector<8x8xbf16>, vector<8x256xbf16>, vector<8x256xf32> -> vector<8x256xf32>
      %c0_21 = arith.constant 0 : index
      %c0_22 = arith.constant 0 : index
      %31 = vector.load %arg4[%c0_21, %c0_22] : memref<8x1xf32, #tpu.memory_space<vmem>>, vector<8x1xf32>
      %32 = vector.broadcast %31 : vector<8x1xf32> to vector<8x256xf32>
      %33 = arith.addf %30, %32 : vector<8x256xf32>
      %34 = arith.truncf %33 : vector<8x256xf32> to vector<8x256xbf16>
      %c0_23 = arith.constant 0 : index
      %c0_24 = arith.constant 0 : index
      %35 = vector.load %arg8[%c0_23, %c0_24] : memref<8x256xbf16, #tpu.memory_space<vmem>>, vector<8x256xbf16>
      tpu.vector_store %arg8[%c0_23, %c0_24], %34 {strides = array<i32>} : memref<8x256xbf16, #tpu.memory_space<vmem>>, vector<8x256xbf16>,
    } else {
    }
    %c128_i32 = arith.constant 128 : i32
    %3 = arith.muli %arg1, %c128_i32 : i32
    %4 = tpu.assume_multiple %3, 128 : i32
    %c0 = arith.constant 0 : index
    %c0_1 = arith.constant 0 : index
    %5 = arith.index_cast %4 : i32 to index
    %6 = vector.load %arg2[%c0, %c0_1, %5] : memref<1x8x256xbf16, #tpu.memory_space<vmem>>, vector<1x8x128xbf16>
    %7 = vector.shape_cast %6 : vector<1x8x128xbf16> to vector<8x128xbf16>
    %c0_2 = arith.constant 0 : index
    %c0_3 = arith.constant 0 : index
    %8 = vector.load %arg5[%c0_2, %c0_3] : memref<8x8xbf16, #tpu.memory_space<vmem>>, vector<8x8xbf16>
    %cst = arith.constant dense<0.000000e+00> : vector<8x128xf32>
    %9 = tpu.matmul %8, %7, %cst {dimension_numbers = #tpu.dot_dimension_numbers<[1], [0], [0], [1], [0, 0, 1, 1], [], []>} : vector<8x8xbf16>, vector<8x128xbf16>, vector<8x128xf32> -> vector<8x128xf32>
    %c0_4 = arith.constant 0 : index
    %c0_5 = arith.constant 0 : index
    %10 = vector.load %arg6[%c0_4, %c0_5] : memref<8x1xf32, #tpu.memory_space<vmem>>, vector<8x1xf32>
    %11 = vector.broadcast %10 : vector<8x1xf32> to vector<8x128xf32>
    %12 = arith.addf %9, %11 : vector<8x128xf32>
    %13 = arith.truncf %12 : vector<8x128xf32> to vector<8x128xbf16>
    %c0_6 = arith.constant 0 : index
    %c0_7 = arith.constant 0 : index
    %14 = vector.load %arg8[%c0_6, %c0_7] : memref<8x256xbf16, #tpu.memory_space<vmem>>, vector<8x256xbf16>
    %cst_8 = arith.constant dense<0.000000e+00> : vector<128x256xf32>
    %15 = tpu.matmul %13, %14, %cst_8 {dimension_numbers = #tpu.dot_dimension_numbers<[0], [0], [1], [1], [0, 1, 1, 1], [], []>} : vector<8x128xbf16>, vector<8x256xbf16>, vector<128x256xf32> -> vector<128x256xf32>
    %cst_9 = arith.constant 5.000000e-01 : f32
    %16 = vector.broadcast %cst_9 : f32 to vector<128x256xf32>
    %17 = arith.mulf %16, %15 : vector<128x256xf32>
    %18 = math.tanh %17 : vector<128x256xf32>
    %cst_10 = arith.constant 5.000000e-01 : f32
    %19 = vector.broadcast %cst_10 : f32 to vector<128x256xf32>
    %20 = arith.mulf %19, %18 : vector<128x256xf32>
    %cst_11 = arith.constant 5.000000e-01 : f32
    %21 = vector.broadcast %cst_11 : f32 to vector<128x256xf32>
    %22 = arith.addf %20, %21 : vector<128x256xf32>
    %23 = arith.truncf %22 : vector<128x256xf32> to vector<128x256xbf16>
    %c0_12 = arith.constant 0 : index
    %c0_13 = arith.constant 0 : index
    %c0_14 = arith.constant 0 : index
    %24 = vector.load %arg7[%c0_12, %c0_13, %c0_14] : memref<1x128x256xbf16, #tpu.memory_space<vmem>>, vector<1x128x256xbf16>
    %25 = vector.shape_cast %24 : vector<1x128x256xbf16> to vector<128x256xbf16>
    %26 = vector.shape_cast %23 : vector<128x256xbf16> to vector<1x128x256xbf16>
    tpu.vector_store %arg7[%c0_12, %c0_13, %c0_14], %26 {strides = array<i32>} : memref<1x128x256xbf16, #tpu.memory_space<vmem>>, vector<1x128x256xbf16>,
    return
  }
  func.func @transform_0(%arg0: i32, %arg1: i32) -> (i32, i32, i32) {
    %c0_i32 = arith.constant 0 : i32
    %c0_i32_0 = arith.constant 0 : i32
    %c0_i32_1 = arith.constant 0 : i32
    return %arg0, %c0_i32, %c0_i32_0 : i32, i32, i32
  }
  func.func @transform_1(%arg0: i32, %arg1: i32) -> (i32, i32) {
    %c0_i32 = arith.constant 0 : i32
    %c0_i32_0 = arith.constant 0 : i32
    %c0_i32_1 = arith.constant 0 : i32
    return %c0_i32, %c0_i32_0 : i32, i32
  }
  func.func @transform_2(%arg0: i32, %arg1: i32) -> (i32, i32) {
    %c0_i32 = arith.constant 0 : i32
    %c0_i32_0 = arith.constant 0 : i32
    %c0_i32_1 = arith.constant 0 : i32
    return %c0_i32, %c0_i32_0 : i32, i32
  }
  func.func @transform_3(%arg0: i32, %arg1: i32) -> (i32, i32) {
    %c0_i32 = arith.constant 0 : i32
    %c0_i32_0 = arith.constant 0 : i32
    %c0_i32_1 = arith.constant 0 : i32
    return %c0_i32, %c0_i32_0 : i32, i32
  }
  func.func @transform_4(%arg0: i32, %arg1: i32) -> (i32, i32) {
    %c0_i32 = arith.constant 0 : i32
    %c0_i32_0 = arith.constant 0 : i32
    %c0_i32_1 = arith.constant 0 : i32
    return %c0_i32, %c0_i32_0 : i32, i32
  }
  func.func @transform_5(%arg0: i32, %arg1: i32) -> (i32, i32, i32) {
    %c0_i32 = arith.constant 0 : i32
    %c0_i32_0 = arith.constant 0 : i32
    return %arg0, %arg1, %c0_i32 : i32, i32, i32
  }
}

</mosaic_0001>

<bundles_post_ra>
// kernel: tpu_custom_call.1
= control target key start
LH: loop header
LB: loop body
LE: loop exit
PB: predicated region body
PF: predicated region fallthrough
CT: control target
= control target key end

     0   :  { %10 = vsyncpa [#allocation4], 0  ;;  %s1431_s0 = inlined_call_operand.vmem [shape: bf16[2,8,256], index: 0, kind: input, shape index: {}]   ;;  %s1432_s1 = inlined_call_operand.vmem [shape: bf16[8,8], index: 1, kind: input, shape index: {}]   ;;  %s1433_s2 = inlined_call_operand.vmem [shape: f32[8,1], index: 2, kind: input, shape index: {}]   ;;  %s1434_s3 = inlined_call_operand.vmem [shape: bf16[8,8], index: 3, kind: input, shape index: {}]   ;;  %s1435_s4 = inlined_call_operand.vmem [shape: f32[8,1], index: 4, kind: input, shape index: {}]   ;;  %s1436_s5 = inlined_call_operand.hbm [shape: bf16[2,256,256], index: 5, kind: output, shape index: {}]  }
   0x1   :  { %12 = vsyncpa [#allocation4 + $0x1], 0  ;;  %s1239_s18 = smov 0   ;;  %s1241_s19 = smov 0  }
   0x2   :  { %s1243_s20 = smov 0   ;;  %s1245_s21 = smov 0  }
   0x3   :  { %s1247_s22 = smov 0   ;;  %s1249_s23 = smov 0  }
   0x4   :  { %s1251_s24 = smov 0   ;;  %s1253_s25 = smov 0  }
   0x5 LB: > { %s879_s26 = sadd.s32 4294967295, %s1200_s25   ;;  %s880_s27 = sadd.s32 4294967294, %s1200_s25   ;;  %s1200_s25 = sphi %s1253_s25, %s18_s25   ;;  %s1196_s24 = sphi %s1251_s24, %s1445_s24   ;;  %s1192_s23 = sphi %s1249_s23, %s1444_s23   ;;  %s1188_s22 = sphi %s1247_s22, %s1443_s22   ;;  %s1184_s21 = sphi %s1245_s21, %s1442_s21   ;;  %s1180_s20 = sphi %s1243_s20, %s1441_s20   ;;  %s1176_s19 = sphi %s1241_s19, %s1440_s19   ;;  %s1172_s18 = sphi %s1239_s18, %s1439_s18  }
   0x6   : > { %s27_s28 = sadd.s32 1, %s1192_s23  ;;  %s30_s29 = sadd.s32 1, %s1196_s24 }
   0x7   : > { %p28_p0 = scmp.ge.s32.totalorder %s27_s28, 2  ;;  %p159_p1 = scmp.ne.s32.totalorder %s1180_s20, %s1176_s19 }
   0x8   : > { %p160_p2 = scmp.eq.s32.totalorder %s879_s26, 3  ;;  %p165_p5 = scmp.ne.s32.totalorder %s1176_s19, %s1172_s18 }
   0x9   : > { %s1447_s28 = smov (%p28_p0, %s27_s28), 0  ;;  %s1449_s29 = smov (!%p28_p0, %s30_s29), %s1196_s24 }
   0xa   : > { %s145_s30 = ssub.s32 %s1192_s23, %s1447_s28  ;;  %p1290_p3 = por %p160_p2, %p159_p1 }
   0xb   : > { %p32_p4 = scmp.ge.s32.totalorder %s1449_s29, 2  ;;  %p166_p6 = scmp.eq.s32.totalorder %s880_s27, 3 }
   0xc   : > { %p883_p7 = scmp.ge.s32.totalorder %s1200_s25, 1  ;;  %p204_p9 = scmp.lt.s32.totalorder %s1200_s25, 5 }
   0xd   : > { %s1451_s29 = smov (%p32_p4, %s1449_s29), 0  ;;  %p1299_p8 = por %p166_p6, %p165_p5 }
   0xe   : > { %s144_s8 = ssub.s32 %s1196_s24, %s1451_s29  ;;  %s149_s9 = sadd.s32 1, %s1180_s20 }
   0xf   : > { %s146_s10 = sor.u32 %s145_s30, %s144_s8  ;;  %p205_p10 = pnand %p883_p7, %p204_p9 }
  0x10   : > { %p147_p11 = scmp.eq.s32.totalorder %s146_s10, 0  ;;  %s229_s12 = sand.u32 (!%p205_p10), 1, %s1176_s19  }
  0x11   : > { %208 = sbr.rel (%p205_p10) target bundleno = 874 (0x36a), region = 40  ;;  %p232_p12 = scmp.lt.s32.totalorder (!%p205_p10), %s1188_s22, 1 }
  0x12   : > { %s1308_s11 = scalar_select %p147_p11, %s1180_s20, %s149_s9  }
  0x13   : > { %s884_s13 = sshll.u32 (!%p205_p10), %s229_s12, 7  ;;  %p887_p13 = scmp.ne.s32.totalorder (!%p205_p10), %s1184_s21, 0 }
  0x14   : > { %s1320_s27 = scalar_lea.vmem (!%p205_p10), [#allocation3], %s884_s13 }
  0x18   : > { %s233_s14 = scalar_select %p232_p12, %s1188_s22, 1 }
  0x19   : > { %242 = sbr.rel (%p887_p13) target bundleno = 253 (0xfd), region = 44  ;;  %vm260_vm0 = vcmask (!%p887_p13), 1043456   ;;  %v1202_v3 = vmov (!%p887_p13), 0   ;;  %v245_v4 = vld [vmem:[%s1433_s2] sm:$0xff] (!%p887_p13)  ;;  %vm256_vm1 = vcmask (!%p887_p13), 64512  }
  0x1a   : > { %s930_s15 = sshll.u32 %s233_s14, 3  ;;  %299 = vmatprep.mubr.bf16.mxu0 (!%p887_p13), %v1202_v3  ;;  %1036 = vset.pattern.permute.xlu0 (!%p887_p13), %v1202_v3  ;;  %v243_v6 = vld [vmem:[%s1432_s1] sm:$0xf] (!%p887_p13) }
  0x1b   : > { %s1318_s26 = scalar_lea.vmem %s1431_s0, %s930_s15  ;;  %248 = vperm.xlu0 (!%p887_p13), %1036, %v245_v4  }
  0x1c   : > { %v244_v0 = vld [vmem:[%s1318_s26] sm:$0xff] (!%p887_p13) }
  0x1d   : > { %v889_v1 = vcombine.high (!%p887_p13), %v244_v0, %v244_v0  ;;  %v888_v2 = vcombine.low (!%p887_p13), %v244_v0, %v244_v0 }
  0x1f   : > { %890 = vmatprep.subr.msk.bf16.mxu0 (!%p887_p13), %vm260_vm0, %v889_v1  ;;  %v262_v5 = vsel (!%p887_p13), %vm260_vm0, %v888_v2, 0 }
  0x20   : > { %268 = vmatpush1.bf16.msra.mxu0 %v262_v5 }
  0x23   : > { %891 = vmatmul.mubr.msk.bf16.vlgmr.msra.gmra.mrb[0].mxu0 %vm256_vm1, %v243_v6 }
  0x9a   : > { %v249_v7 = vpop.permute.xlu0 %248 }
  0xf6   : > { %v301_v8 = vpop.f32.mrb[0].mxu0 }
  0xf7   : > { %v302_v9 = vadd.f32 %v301_v8, %v249_v7  ;;  %v303_v10 = vpop.f32.mrb[1].mxu0 }
  0xf8   : > { %v304_v11 = vadd.f32 %v303_v10, %v249_v7  ;;  %v305_v12 = vpop.f32.mrb[2].mxu0 }
  0xf9   : > { %v306_v13 = vpop.f32.mrb[3].mxu0 }
  0xfa   : > { %v931_v14 = vpack.c.bf16 %v304_v11, %v302_v9 }
  0xfc   : > { %316 = vst [vmem:[#allocation2] sm:$0xff] %v931_v14 }
  0xfd PF: > { %s893_s13 = sshll.u32 %s1184_s21, 7  ;;  %v1203_v15 = vmov 0.0   ;;  %vm1204_vm2 = vmmov 0   ;;  %v324_v16 = vld [vmem:[%s1435_s4] sm:$0xff]  ;;  %vm334_vm3 = vcmask 1043456   ;;  %v1205_v17 = vmov 0  }
  0xfe   : > { %951 = vmatprep.subr.bf16.mxu0 %v1203_v15  ;;  %s318_s14 = sshra.s32 %s893_s13, 7  ;;  %953 = vmatprep.mubr.msk.bf16.mxu0 %vm1204_vm2, %v1203_v15  ;;  %v323_v20 = vld [vmem:[%s1434_s3] sm:$0xf]  ;;  %vm330_vm4 = vcmask 64512   ;;  %s926_s10 = sshll.u32 %s1188_s22, 6 }
  0xff   : > { %s894_s17 = sshll.u32 %s318_s14, 2  ;;  %1039 = vset.pattern.permute.xlu0 %v1205_v17  ;;  %493 = vmatprep.mubr.bf16.mxu1 %v1205_v17  ;;  %s801_s22 = sshll.u32 %s1320_s27, 4  ;;  %s1373_s22 = int_to_ptr.vmem [resolvable:$true] %s801_s22 }
 0x100   : > { %s321_s30 = scalar_lea.vmem %s1318_s26, %s894_s17  ;;  %327 = vperm.xlu0 %1039, %v324_v16   ;;  %s948_s26 = sshll.u32 %s1184_s21, 5 }
 0x101   : > { %v322_v18 = vld [vmem:[%s321_s30] sm:$0xf]  ;;  %s798_s13 = sadd.s32 %s948_s26, %s926_s10  ;;  %s1379_s17 = scalar_lea.sflag [#allocation4], %s229_s12 }
 0x102   : > { %v336_v19 = vsel %vm334_vm3, %v322_v18, 0  ;;  %s927_s21 = sshll.u32 %s798_s13, 6  ;;  %s1106_s30 = scalar_lea.vmem %s1373_s22, 2048 }
 0x103   : > { %952 = vmatpush3.bf16.msra.mxu0 %v336_v19  ;;  %v379_v21 = vld [vmem:[#allocation2] sm:$0xff]  ;;  %s1371_s16 = scalar_lea.hbm %s1436_s5, %s927_s21  ;;  %p1107_p0 = scmp.ne.s32.totalorder %s1373_s22, %s1106_s30 }
 0x104   : > { %v897_v22 = vcombine.high %v379_v21, %v379_v21  ;;  %v896_v23 = vcombine.low %v379_v21, %v379_v21  ;;  %s1206_s8 = smov [#allocation3]  }
 0x105   : > { %p1108_p1 = pnand %p1107_p0, %p1290_p3  ;;  %s1110_s9 = sshll.u32 %s1206_s8, 4  ;;  %s1111_s9 = int_to_ptr.vmem [resolvable:$false] %s1110_s9 }
 0x106   : > { %954 = vmatmul.mubr.msk.bf16.vlgmr.msra.gmra.mrb[0].mxu0 %vm330_vm4, %v323_v20  ;;  %898 = vmatprep.subr.msk.bf16.mxu0 %vm334_vm3, %v897_v22  ;;  %v426_v24 = vsel %vm334_vm3, %v896_v23, 0  ;;  %s1112_s26 = scalar_lea.vmem %s1111_s9, 4096  ;;  %p1113_p4 = scmp.lt.s32.totalorder %s1373_s22, %s1111_s9 }
 0x107   : > { %463 = vmatprep.mubr.bf16.mxu0 %v1205_v17  ;;  %957 = vmatprep.subr.msk.bf16.mxu1 %vm334_vm3, %v897_v22  ;;  %p1109_p2 = pneg %p1108_p1  ;;  %p1114_p5 = scmp.lt.s32.totalorder %s1112_s26, %s1106_s30 }
 0x108   : > { %432 = vmatpush1.bf16.msra.mxu0 %v426_v24  ;;  %958 = vmatpush1.bf16.msra.mxu1 %v426_v24 }
 0x109   : > { %p1115_p6 = por %p1114_p5, %p1113_p4 }
 0x10b   : > { %p1116_p7 = pnand %p1115_p6, %p1109_p2 }
 0x17f   : > { %v328_v25 = vpop.permute.xlu0 %327 }
 0x1d9   : > { %v372_v26 = vpop.f32.mrb[0].mxu0 }
 0x1da   : > { %v373_v27 = vadd.f32 %v372_v26, %v328_v25  ;;  %v955_v28 = vpop.f32.mrb[1].mxu0 }
 0x1db   : > { %v375_v29 = vpop.f32.mrb[2].mxu0 }
 0x1dc   : > { %v378_v30 = vpack.c.bf16 %v373_v27, %v373_v27  ;;  %v956_v31 = vpop.f32.mrb[3].mxu0 }
 0x1de   : > { %380 = vxpose.xlu0.c.b16.start.end [1/1] (short) %v378_v30, 128 }
 0x244   : > { %v388_v32 = vpop.trf.xlu0 }
 0x245   : > { %899 = vmatmul.mubr.msk.bf16.vlgmr.msra.gmra.mrb[4].mxu0 %vm330_vm4, %v388_v32 }
 0x246   : > { %473 = vmatprep.mubr.bf16.mxu0 %v1205_v17 }
 0x248   : > { %v389_v33 = vpop.trf.xlu0 }
 0x24c   : > { %v390_v34 = vpop.trf.xlu0 }
 0x24d   : > { %900 = vmatmul.mubr.msk.bf16.gmra.mrb[8].mxu0 %vm330_vm4, %v389_v33 }
 0x24e   : > { %483 = vmatprep.mubr.bf16.mxu0 %v1205_v17 }
 0x250   : > { %v391_v35 = vpop.trf.xlu0 }
 0x251   : > { %902 = vmatmul.mubr.msk.bf16.vlgmr.msra.gmra.mrb[0].mxu1 %vm330_vm4, %v391_v35 }
 0x252   : > { %503 = vmatprep.mubr.bf16.mxu1 %v1205_v17 }
 0x254   : > { %v392_v36 = vpop.trf.xlu0 }
 0x255   : > { %901 = vmatmul.mubr.msk.bf16.gmra.mrb[12].mxu0 %vm330_vm4, %v390_v34 }
 0x258   : > { %v393_v37 = vpop.trf.xlu0 }
 0x259   : > { %903 = vmatmul.mubr.msk.bf16.gmra.mrb[4].mxu1 %vm330_vm4, %v392_v36 }
 0x25a   : > { %513 = vmatprep.mubr.bf16.mxu1 %v1205_v17 }
 0x25c   : > { %v394_v38 = vpop.trf.xlu0 }
 0x260   : > { %v395_v39 = vpop.trf.xlu0 }
 0x261   : > { %904 = vmatmul.mubr.msk.bf16.gmra.mrb[8].mxu1 %vm330_vm4, %v393_v37 }
 0x262   : > { %523 = vmatprep.mubr.bf16.mxu1 %v1205_v17 }
 0x269   : > { %905 = vmatmul.mubr.msk.bf16.gmra.mrb[12].mxu1 %vm330_vm4, %v394_v38 }
 0x26a   : > { %533 = vmatprep.mubr.bf16.mxu1 %v1205_v17 }
 0x271   : > { %906 = vmatmul.mubr.msk.bf16.gmra.mrb[16].mxu1 %vm330_vm4, %v395_v39 }
 0x318   : > { %v465_v40 = vpop.f32.mrb[4].mxu0 }
 0x319   : > { %v544_v41 = vmul.f32 0.5, %v465_v40  ;;  %v467_v42 = vpop.f32.mrb[5].mxu0 }
 0x31a   : > { %v545_v43 = vmul.f32 0.5, %v467_v42  ;;  %v469_v44 = vpop.f32.mrb[6].mxu0 }
 0x31b   : > { %1042 = vtanh.f32 %v544_v41  ;;  %v546_v45 = vmul.f32 0.5, %v469_v44  ;;  %v471_v46 = vpop.f32.mrb[7].mxu0 }
 0x31c   : > { %1044 = vtanh.f32 %v545_v43  ;;  %v547_v47 = vmul.f32 0.5, %v471_v46 }
 0x31d   : > { %1046 = vtanh.f32 %v546_v45 }
 0x31e   : > { %1048 = vtanh.f32 %v547_v47 }
 0x320   : > { %v475_v48 = vpop.f32.mrb[8].mxu0 }
 0x321   : > { %v548_v49 = vmul.f32 0.5, %v475_v48  ;;  %v477_v50 = vpop.f32.mrb[9].mxu0 }
 0x322   : > { %v549_v51 = vmul.f32 0.5, %v477_v50  ;;  %v479_v52 = vpop.f32.mrb[10].mxu0 }
 0x323   : > { %1050 = vtanh.f32 %v548_v49  ;;  %v550_v53 = vmul.f32 0.5, %v479_v52  ;;  %v481_v54 = vpop.f32.mrb[11].mxu0 }
 0x324   : > { %1052 = vtanh.f32 %v549_v51  ;;  %v551_v55 = vmul.f32 0.5, %v481_v54  ;;  %v495_v56 = vpop.f32.mrb[0].mxu1 }
 0x325   : > { %v1043_v57 = vpop.eup %1042  ;;  %1054 = vtanh.f32 %v550_v53  ;;  %v556_v58 = vmul.f32 0.5, %v495_v56  ;;  %v497_v59 = vpop.f32.mrb[1].mxu1 }
 0x326   : > { %v1045_v60 = vpop.eup %1044  ;;  %v608_v61 = vmul.f32 0.5, %v1043_v57  ;;  %1056 = vtanh.f32 %v551_v55  ;;  %v557_v62 = vmul.f32 0.5, %v497_v59  ;;  %v499_v63 = vpop.f32.mrb[2].mxu1 }
 0x327   : > { %v1047_v0 = vpop.eup %1046  ;;  %v609_v1 = vmul.f32 0.5, %v1045_v60  ;;  %1058 = vtanh.f32 %v556_v58  ;;  %v558_v2 = vmul.f32 0.5, %v499_v63  ;;  %v501_v3 = vpop.f32.mrb[3].mxu1 }
 0x328   : > { %v1049_v4 = vpop.eup %1048  ;;  %v640_v5 = vadd.f32 0.5, %v608_v61  ;;  %v610_v6 = vmul.f32 0.5, %v1047_v0  ;;  %1060 = vtanh.f32 %v557_v62  ;;  %v559_v7 = vmul.f32 0.5, %v501_v3  ;;  %v485_v8 = vpop.f32.mrb[12].mxu0 }
 0x329   : > { %v641_v9 = vadd.f32 0.5, %v609_v1  ;;  %v611_v10 = vmul.f32 0.5, %v1049_v4  ;;  %1062 = vtanh.f32 %v558_v2  ;;  %v552_v11 = vmul.f32 0.5, %v485_v8  ;;  %v487_v12 = vpop.f32.mrb[13].mxu0 }
 0x32a   : > { %v642_v13 = vadd.f32 0.5, %v610_v6  ;;  %1064 = vtanh.f32 %v559_v7  ;;  %v553_v14 = vmul.f32 0.5, %v487_v12  ;;  %v489_v15 = vpop.f32.mrb[14].mxu0 }
 0x32b   : > { %v932_v16 = vpack.c.bf16 %v641_v9, %v640_v5  ;;  %v643_v17 = vadd.f32 0.5, %v611_v10  ;;  %1066 = vtanh.f32 %v552_v11  ;;  %v554_v18 = vmul.f32 0.5, %v489_v15  ;;  %v491_v19 = vpop.f32.mrb[15].mxu0 }
 0x32c   : > { %1068 = vtanh.f32 %v553_v14  ;;  %v555_v20 = vmul.f32 0.5, %v491_v19  ;;  %v505_v21 = vpop.f32.mrb[4].mxu1 }
 0x32d   : > { %v1051_v22 = vpop.eup %1050  ;;  %768 = vst [vmem:[%s1320_s27] sm:$0xff] %v932_v16  ;;  %v933_v23 = vpack.c.bf16 %v643_v17, %v642_v13  ;;  %1070 = vtanh.f32 %v554_v18  ;;  %v560_v24 = vmul.f32 0.5, %v505_v21  ;;  %v507_v25 = vpop.f32.mrb[5].mxu1 }
 0x32e   : > { %v1053_v26 = vpop.eup %1052  ;;  %v612_v27 = vmul.f32 0.5, %v1051_v22  ;;  %1072 = vtanh.f32 %v555_v20  ;;  %v561_v28 = vmul.f32 0.5, %v507_v25  ;;  %v509_v29 = vpop.f32.mrb[6].mxu1 }
 0x32f   : > { %v1055_v30 = vpop.eup %1054  ;;  %769 = vst [vmem:[%s1320_s27 + $0x8] sm:$0xff] %v933_v23  ;;  %v613_v31 = vmul.f32 0.5, %v1053_v26  ;;  %1074 = vtanh.f32 %v560_v24  ;;  %v562_v32 = vmul.f32 0.5, %v509_v29  ;;  %v511_v33 = vpop.f32.mrb[7].mxu1 }
 0x330   : > { %v1057_v34 = vpop.eup %1056  ;;  %v644_v35 = vadd.f32 0.5, %v612_v27  ;;  %v614_v36 = vmul.f32 0.5, %v1055_v30  ;;  %1076 = vtanh.f32 %v561_v28  ;;  %v563_v37 = vmul.f32 0.5, %v511_v33 }
 0x331   : > { %v1059_v38 = vpop.eup %1058  ;;  %v645_v39 = vadd.f32 0.5, %v613_v31  ;;  %v615_v40 = vmul.f32 0.5, %v1057_v34  ;;  %1078 = vtanh.f32 %v562_v32 }
 0x332   : > { %v1061_v41 = vpop.eup %1060  ;;  %v646_v42 = vadd.f32 0.5, %v614_v36  ;;  %v620_v43 = vmul.f32 0.5, %v1059_v38  ;;  %1080 = vtanh.f32 %v563_v37 }
 0x333   : > { %v1063_v44 = vpop.eup %1062  ;;  %v934_v45 = vpack.c.bf16 %v645_v39, %v644_v35  ;;  %v647_v46 = vadd.f32 0.5, %v615_v40  ;;  %v621_v47 = vmul.f32 0.5, %v1061_v41 }
 0x334   : > { %v1065_v48 = vpop.eup %1064  ;;  %v652_v49 = vadd.f32 0.5, %v620_v43  ;;  %v622_v50 = vmul.f32 0.5, %v1063_v44  ;;  %v515_v51 = vpop.f32.mrb[8].mxu1 }
 0x335   : > { %v1067_v52 = vpop.eup %1066  ;;  %770 = vst [vmem:[%s1320_s27 + $0x10] sm:$0xff] %v934_v45  ;;  %v935_v53 = vpack.c.bf16 %v647_v46, %v646_v42  ;;  %v653_v54 = vadd.f32 0.5, %v621_v47  ;;  %v623_v55 = vmul.f32 0.5, %v1065_v48  ;;  %v564_v56 = vmul.f32 0.5, %v515_v51  ;;  %v517_v57 = vpop.f32.mrb[9].mxu1 }
 0x336   : > { %v1069_v58 = vpop.eup %1068  ;;  %v654_v59 = vadd.f32 0.5, %v622_v50  ;;  %v616_v60 = vmul.f32 0.5, %v1067_v52  ;;  %v565_v61 = vmul.f32 0.5, %v517_v57  ;;  %v519_v62 = vpop.f32.mrb[10].mxu1 }
 0x337   : > { %v1071_v63 = vpop.eup %1070  ;;  %771 = vst [vmem:[%s1320_s27 + $0x18] sm:$0xff] %v935_v53  ;;  %v938_v0 = vpack.c.bf16 %v653_v54, %v652_v49  ;;  %v655_v1 = vadd.f32 0.5, %v623_v55  ;;  %v617_v2 = vmul.f32 0.5, %v1069_v58  ;;  %1082 = vtanh.f32 %v564_v56  ;;  %v521_v3 = vpop.f32.mrb[11].mxu1 }
 0x338   : > { %v1073_v4 = vpop.eup %1072  ;;  %v648_v5 = vadd.f32 0.5, %v616_v60  ;;  %v618_v6 = vmul.f32 0.5, %v1071_v63  ;;  %1084 = vtanh.f32 %v565_v61  ;;  %v566_v7 = vmul.f32 0.5, %v519_v62 }
 0x339   : > { %v1075_v8 = vpop.eup %1074  ;;  %774 = vst [vmem:[%s1320_s27 + $0x30] sm:$0xff] %v938_v0  ;;  %v939_v9 = vpack.c.bf16 %v655_v1, %v654_v59  ;;  %v649_v10 = vadd.f32 0.5, %v617_v2  ;;  %v619_v11 = vmul.f32 0.5, %v1073_v4  ;;  %v567_v12 = vmul.f32 0.5, %v521_v3 }
 0x33a   : > { %v1077_v13 = vpop.eup %1076  ;;  %v650_v14 = vadd.f32 0.5, %v618_v6  ;;  %v624_v15 = vmul.f32 0.5, %v1075_v8  ;;  %1086 = vtanh.f32 %v566_v7 }
 0x33b   : > { %v1079_v16 = vpop.eup %1078  ;;  %775 = vst [vmem:[%s1320_s27 + $0x38] sm:$0xff] %v939_v9  ;;  %v936_v17 = vpack.c.bf16 %v649_v10, %v648_v5  ;;  %v651_v18 = vadd.f32 0.5, %v619_v11  ;;  %v625_v19 = vmul.f32 0.5, %v1077_v13  ;;  %1088 = vtanh.f32 %v567_v12 }
 0x33c   : > { %v1081_v20 = vpop.eup %1080  ;;  %v656_v21 = vadd.f32 0.5, %v624_v15  ;;  %v626_v22 = vmul.f32 0.5, %v1079_v16  ;;  %v525_v23 = vpop.f32.mrb[12].mxu1 }
 0x33d   : > { %772 = vst [vmem:[%s1320_s27 + $0x20] sm:$0xff] %v936_v17  ;;  %v937_v24 = vpack.c.bf16 %v651_v18, %v650_v14  ;;  %v657_v25 = vadd.f32 0.5, %v625_v19  ;;  %v627_v26 = vmul.f32 0.5, %v1081_v20  ;;  %v568_v27 = vmul.f32 0.5, %v525_v23  ;;  %v527_v28 = vpop.f32.mrb[13].mxu1 }
 0x33e   : > { %v658_v29 = vadd.f32 0.5, %v626_v22  ;;  %v569_v30 = vmul.f32 0.5, %v527_v28  ;;  %v529_v31 = vpop.f32.mrb[14].mxu1 }
 0x33f   : > { %773 = vst [vmem:[%s1320_s27 + $0x28] sm:$0xff] %v937_v24  ;;  %v940_v32 = vpack.c.bf16 %v657_v25, %v656_v21  ;;  %v659_v33 = vadd.f32 0.5, %v627_v26  ;;  %1090 = vtanh.f32 %v568_v27  ;;  %v570_v34 = vmul.f32 0.5, %v529_v31  ;;  %v531_v35 = vpop.f32.mrb[15].mxu1 }
 0x340   : > { %1092 = vtanh.f32 %v569_v30  ;;  %v571_v36 = vmul.f32 0.5, %v531_v35 }
 0x341   : > { %v1083_v37 = vpop.eup %1082  ;;  %776 = vst [vmem:[%s1320_s27 + $0x40] sm:$0xff] %v940_v32  ;;  %v941_v38 = vpack.c.bf16 %v659_v33, %v658_v29  ;;  %1094 = vtanh.f32 %v570_v34 }
 0x342   : > { %v1085_v39 = vpop.eup %1084  ;;  %v628_v40 = vmul.f32 0.5, %v1083_v37  ;;  %1096 = vtanh.f32 %v571_v36 }
 0x343   : > { %777 = vst [vmem:[%s1320_s27 + $0x48] sm:$0xff] %v941_v38  ;;  %v629_v41 = vmul.f32 0.5, %v1085_v39 }
 0x344   : > { %v1087_v42 = vpop.eup %1086  ;;  %v660_v43 = vadd.f32 0.5, %v628_v40  ;;  %v535_v44 = vpop.f32.mrb[16].mxu1 }
 0x345   : > { %v1089_v45 = vpop.eup %1088  ;;  %v661_v46 = vadd.f32 0.5, %v629_v41  ;;  %v630_v47 = vmul.f32 0.5, %v1087_v42  ;;  %v572_v48 = vmul.f32 0.5, %v535_v44  ;;  %v537_v49 = vpop.f32.mrb[17].mxu1 }
 0x346   : > { %v631_v50 = vmul.f32 0.5, %v1089_v45  ;;  %v573_v51 = vmul.f32 0.5, %v537_v49  ;;  %v539_v52 = vpop.f32.mrb[18].mxu1 }
 0x347   : > { %v942_v53 = vpack.c.bf16 %v661_v46, %v660_v43  ;;  %v662_v54 = vadd.f32 0.5, %v630_v47  ;;  %1098 = vtanh.f32 %v572_v48  ;;  %v574_v55 = vmul.f32 0.5, %v539_v52  ;;  %v541_v56 = vpop.f32.mrb[19].mxu1 }
 0x348   : > { %v663_v57 = vadd.f32 0.5, %v631_v50  ;;  %1100 = vtanh.f32 %v573_v51  ;;  %v575_v58 = vmul.f32 0.5, %v541_v56 }
 0x349   : > { %v1091_v59 = vpop.eup %1090  ;;  %778 = vst [vmem:[%s1320_s27 + $0x50] sm:$0xff] %v942_v53  ;;  %1102 = vtanh.f32 %v574_v55 }
 0x34a   : > { %v1093_v60 = vpop.eup %1092  ;;  %v943_v61 = vpack.c.bf16 %v663_v57, %v662_v54  ;;  %v632_v62 = vmul.f32 0.5, %v1091_v59  ;;  %1104 = vtanh.f32 %v575_v58 }
 0x34b   : > { %v1095_v63 = vpop.eup %1094  ;;  %v633_v0 = vmul.f32 0.5, %v1093_v60 }
 0x34c   : > { %v1097_v1 = vpop.eup %1096  ;;  %779 = vst [vmem:[%s1320_s27 + $0x58] sm:$0xff] %v943_v61  ;;  %v664_v2 = vadd.f32 0.5, %v632_v62  ;;  %v634_v3 = vmul.f32 0.5, %v1095_v63 }
 0x34d   : > { %v665_v4 = vadd.f32 0.5, %v633_v0  ;;  %v635_v5 = vmul.f32 0.5, %v1097_v1 }
 0x34e   : > { %v666_v6 = vadd.f32 0.5, %v634_v3 }
 0x34f   : > { %v944_v7 = vpack.c.bf16 %v665_v4, %v664_v2  ;;  %v667_v8 = vadd.f32 0.5, %v635_v5 }
 0x351   : > { %v1099_v9 = vpop.eup %1098  ;;  %780 = vst [vmem:[%s1320_s27 + $0x60] sm:$0xff] %v944_v7  ;;  %v945_v10 = vpack.c.bf16 %v667_v8, %v666_v6 }
 0x352   : > { %v1101_v11 = vpop.eup %1100  ;;  %v636_v12 = vmul.f32 0.5, %v1099_v9 }
 0x353   : > { %v1103_v13 = vpop.eup %1102  ;;  %781 = vst [vmem:[%s1320_s27 + $0x68] sm:$0xff] %v945_v10  ;;  %v637_v14 = vmul.f32 0.5, %v1101_v11 }
 0x354   : > { %v1105_v15 = vpop.eup %1104  ;;  %v668_v16 = vadd.f32 0.5, %v636_v12  ;;  %v638_v17 = vmul.f32 0.5, %v1103_v13 }
 0x355   : > { %v669_v18 = vadd.f32 0.5, %v637_v14  ;;  %v639_v19 = vmul.f32 0.5, %v1105_v15 }
 0x356   : > { %v670_v20 = vadd.f32 0.5, %v638_v17 }
 0x357   : > { %v946_v21 = vpack.c.bf16 %v669_v18, %v668_v16  ;;  %v671_v22 = vadd.f32 0.5, %v639_v19 }
 0x359   : > { %782 = vst [vmem:[%s1320_s27 + $0x70] sm:$0xff] %v946_v21  ;;  %v947_v23 = vpack.c.bf16 %v671_v22, %v670_v20 }
 0x35b   : > { %783 = vst [vmem:[%s1320_s27 + $0x78] sm:$0xff] %v947_v23 }
 0x35c   : > { %1119 = shalt.err (!%p1116_p7)
}
 0x35d   : > { %s1120_s12 = scalar_lea.hbm %s1371_s16, 2048  ;;  %s1124_s13 = scalar_lea.hbm %s1436_s5, 8192 }
 0x35e   : > { %p1121_p9 = scmp.ne.s32.totalorder %s1371_s16, %s1120_s12  ;;  %p1125_p12 = scmp.lt.u32.totalorder %s1371_s16, %s1436_s5 }
 0x35f   : > { %p1126_p13 = scmp.lt.u32.totalorder %s1124_s13, %s1120_s12  ;;  %p1128_p1 = scmp.lt.u32.totalorder %s1120_s12, %s1371_s16 }
 0x360   : > { %p1122_p10 = pnand %p1121_p9, %p1290_p3 }
 0x361   : > { %p1127_p0 = por %p1126_p13, %p1125_p12 }
 0x362   : > { %p1123_p11 = pneg %p1122_p10 }
 0x363   : > { %p1129_p2 = por %p1128_p1, %p1127_p0 }
 0x365   : > { %p1130_p4 = pnand %p1129_p2, %p1123_p11 }
 0x367   : > { %1133 = shalt.err (!%p1130_p4)
}
 0x368   : > { %s1207_s15 = smov 128   ;;  %s1208_s30 = smov 8  }
 0x369   : > { %959 = dma.vmem_to_hbm [thread:$0]  (%p1290_p3), %s1373_s22, 2048, %s1371_s16, %s1379_s17, %s1207_s15, %s1207_s15, %s1208_s30  }
 0x36a PF: > { %p965_p5 = scmp.ge.s32.totalorder %s1200_s25, 2  ;;  %s816_s8 = sand.u32 1, %s1172_s18  }
 0x36b   : > { %s817_s9 = scalar_lea.sflag [#allocation4], %s816_s8 }
 0x36c   : > { %p962_p6 = pnand %p965_p5, %p1299_p8 }
 0x36e   : > { %1167 = dma.done.wait (!%p962_p6), %s817_s9, 2048  }
 0x36f   : > { %1169 = vsyncadd (!%p962_p6), %s817_s9, 4294965248  ;;  %s18_s25 = sadd.s32 1, %s1200_s25   ;;  %s1439_s18 = smov %s1176_s19 }
 0x370   : > { %p15_p7 = scmp.ge.s32.totalorder %s18_s25, 6   ;;  %s1440_s19 = smov %s1180_s20 }
 0x371   : > { %s1441_s20 = smov %s1308_s11  ;;  %s1442_s21 = smov %s1192_s23 }
 0x372   : > { %s1443_s22 = smov %s1196_s24  ;;  %s1444_s23 = smov %s1447_s28 }
 0x373   : > { %s1445_s24 = smov %s1451_s29  ;;  %17 = sbr.rel (!%p15_p7) target bundleno = 5 (0x5), region = 80 }
 0x37a   :  { %822 = vsyncpa [#allocation4], 1 }
 0x37b   :  { %824 = vsyncpa [#allocation4 + $0x1], 1 }

</bundles_post_ra>
